<compile_context>
chip_gen: v5e
topology: v5e:2x2
jax: 0.10.0
libtpu: 0.0.40
codegen_flags: <defaults>
</compile_context>

<pallas_src>
import jax
import jax.numpy as jnp
from jax.experimental import pallas as pl
from jax.experimental.pallas import tpu as pltpu

K_PAD = 8  # pad the tiny K=3 contraction up to one full sublane


def _linear_relu_kernel(x_ref, w_ref, b_ref, o_ref):
    # x_ref: (M, K_PAD) f32, w_ref: (K_PAD, N) f32, b_ref: (1, N) f32,
    # o_ref: (M, N) f32.
    acc = jnp.dot(x_ref[...], w_ref[...], preferred_element_type=jnp.float32)
    o_ref[...] = jnp.maximum(acc + b_ref[...], 0.0).astype(o_ref.dtype)


def prepare_params(weight, bias):
    """One-time parameter prep: transpose + zero-pad K to a full sublane.

    weight: (N, K) f32, bias: (N,) f32  ->  w_pad: (K_PAD, N), b2d: (1, N)
    """
    N, K = weight.shape
    w_pad = jnp.zeros((K_PAD, N), weight.dtype).at[:K, :].set(weight.T)
    b2d = bias.reshape(1, N)
    return w_pad, b2d


@jax.jit
def linear_relu(x, w_pad, b2d):
    """x: (..., K) f32. Returns relu(x @ W.T + b) with shape (..., N)."""
    *lead, K = x.shape
    M = 1
    for d in lead:
        M *= d
    N = w_pad.shape[1]

    # Reshape + K-padding fuse with the custom call under jit; the kernel
    # never sees a 3-lane-wide block.
    x2d = x.reshape(M, K)
    x2d = jnp.pad(x2d, ((0, 0), (0, K_PAD - K)))

    out2d = pl.pallas_call(
        _linear_relu_kernel,
        out_shape=jax.ShapeDtypeStruct((M, N), x.dtype),
        # Single-shot call (grid=()): full arrays resident in VMEM, no
        # pipeline/grid machinery needed at this size.
        in_specs=[
            pl.BlockSpec(memory_space=pltpu.MemorySpace.VMEM),
            pl.BlockSpec(memory_space=pltpu.MemorySpace.VMEM),
            pl.BlockSpec(memory_space=pltpu.MemorySpace.VMEM),
        ],
        out_specs=pl.BlockSpec(memory_space=pltpu.MemorySpace.VMEM),
    )(x2d, w_pad, b2d)

    # TODO(synk): if the flattened batch M grows large, tile M with
    # grid=(pl.cdiv(M, TM),), TM a multiple of 8 (e.g. 256-512),
    # dimension_semantics=("parallel",) and index_map lambda i: (0, 0) for
    # w_pad/b2d so weights stay resident; unnecessary at these sizes.
    return out2d.reshape(*lead, N)


if __name__ == "__main__":
    key = jax.random.PRNGKey(0)
    kx, kw, kb = jax.random.split(key, 3)

    in_features, out_features = 3, 32
    # Small input consistent with the module (trailing dim = in_features).
    x = jax.random.normal(kx, (2, 5, 5, in_features), dtype=jnp.float32)

    # Deterministic parameter init (mimics nn.Linear's uniform(-1/sqrt(K), 1/sqrt(K))).
    bound = 1.0 / (in_features ** 0.5)
    weight = jax.random.uniform(kw, (out_features, in_features),
                                minval=-bound, maxval=bound, dtype=jnp.float32)
    bias = jax.random.uniform(kb, (out_features,),
                              minval=-bound, maxval=bound, dtype=jnp.float32)

    # One-time parameter preparation (hoisted out of the per-call path).
    w_pad, b2d = prepare_params(weight, bias)
    w_pad, b2d = jax.block_until_ready((w_pad, b2d))

    out = linear_relu(x, w_pad, b2d)
    out = jax.block_until_ready(out)

    # Sanity check against plain-JAX reference.
    ref = jnp.maximum(jnp.einsum("...k,nk->...n", x, weight) + bias, 0.0)
    assert out.shape == (2, 5, 5, out_features)
    assert jnp.allclose(out, ref, atol=1e-5, rtol=1e-5)

    print("KERNEL_OK")
</pallas_src>

<mosaic_0001>
module attributes {stable_mosaic.version = 11 : i64} {
  func.func @_linear_relu_kernel(%arg0: memref<50x8xf32, #tpu.memory_space<vmem>>, %arg1: memref<8x32xf32, #tpu.memory_space<vmem>>, %arg2: memref<1x32xf32, #tpu.memory_space<vmem>>, %arg3: memref<50x32xf32, #tpu.memory_space<vmem>>) attributes {dimension_semantics = [], scalar_prefetch = 0 : i64, scratch_operands = 0 : i64, tpu.core_type = #tpu.core_type<tc>} {
    %c0 = arith.constant 0 : index
    %c0_0 = arith.constant 0 : index
    %0 = vector.load %arg0[%c0, %c0_0] : memref<50x8xf32, #tpu.memory_space<vmem>>, vector<50x8xf32>
    %c0_1 = arith.constant 0 : index
    %c0_2 = arith.constant 0 : index
    %1 = vector.load %arg1[%c0_1, %c0_2] : memref<8x32xf32, #tpu.memory_space<vmem>>, vector<8x32xf32>
    %cst = arith.constant dense<0.000000e+00> : vector<50x32xf32>
    %2 = tpu.matmul %0, %1, %cst {dimension_numbers = #tpu.dot_dimension_numbers<[1], [0], [0], [1], [0, 0, 1, 1], [], []>} : vector<50x8xf32>, vector<8x32xf32>, vector<50x32xf32> -> vector<50x32xf32>
    %c0_3 = arith.constant 0 : index
    %c0_4 = arith.constant 0 : index
    %3 = vector.load %arg2[%c0_3, %c0_4] : memref<1x32xf32, #tpu.memory_space<vmem>>, vector<1x32xf32>
    %4 = vector.broadcast %3 : vector<1x32xf32> to vector<50x32xf32>
    %5 = arith.addf %2, %4 : vector<50x32xf32>
    %cst_5 = arith.constant 0.000000e+00 : f32
    %6 = vector.broadcast %cst_5 : f32 to vector<50x32xf32>
    %7 = arith.maximumf %5, %6 : vector<50x32xf32>
    %c0_6 = arith.constant 0 : index
    %c0_7 = arith.constant 0 : index
    %8 = vector.load %arg3[%c0_6, %c0_7] : memref<50x32xf32, #tpu.memory_space<vmem>>, vector<50x32xf32>
    tpu.vector_store %arg3[%c0_6, %c0_7], %7 {strides = array<i32>} : memref<50x32xf32, #tpu.memory_space<vmem>>, vector<50x32xf32>,
    return
  }
}

</mosaic_0001>

<bundles_post_ra>
// kernel: linear_relu.1
= control target key start
LH: loop header
LB: loop body
LE: loop exit
PB: predicated region body
PF: predicated region fallthrough
CT: control target
= control target key end

     0   :  { %vm26_vm0 = vcmask 64512   ;;  %vm93_vm1 = vcmask 261120   ;;  %vm100_vm2 = vcmask 254976   ;;  %s198_s1 = inlined_call_operand.vmem [shape: f32[8,32], index: 1, kind: input, shape index: {}]   ;;  %s199_s0 = inlined_call_operand.vmem [shape: f32[50,8], index: 0, kind: input, shape index: {}]   ;;  %s200_s2 = inlined_call_operand.vmem [shape: f32[1,32], index: 2, kind: input, shape index: {}]   ;;  %s201_s3 = inlined_call_operand.vmem [shape: f32[50,32], index: 3, kind: output, shape index: {}]  }
   0x1   :  { %v21_v0 = vld [vmem:[%s198_s1] sm:$0xff]  ;;  %v19_v1 = vld [vmem:[%s199_s0 + $0x28] sm:$0xff]  ;;  %v16_v3 = vld [vmem:[%s199_s0 + $0x10] sm:$0xff] }
   0x2   :  { %v14_v2 = vld [vmem:[%s199_s0] sm:$0xff]  ;;  %115 = vmatpush.msra.mxu3 %v21_v0  ;;  %63 = vmatpush.msra.mxu0 %v21_v0  ;;  %v20_v5 = vld [vmem:[%s199_s0 + $0x30] sm:$0x3]  ;;  %v15_v6 = vld [vmem:[%s199_s0 + $0x8] sm:$0xff] }
   0x3   :  { %111 = vmatmul.msk.f32.vlgmr.msra.gmra.mxu3 %vm26_vm0, %v19_v1  ;;  %113 = vmatpush.msra.mxu1 %v21_v0  ;;  %v18_v4 = vld [vmem:[%s199_s0 + $0x20] sm:$0xff]  ;;  %v17_v7 = vld [vmem:[%s199_s0 + $0x18] sm:$0xff] }
   0x4   :  { %106 = vmatmul.msk.f32.vlgmr.msra.gmra.mxu0 %vm26_vm0, %v14_v2  ;;  %108 = vmatmul.msk.f32.vlgmr.msra.gmra.mxu1 %vm26_vm0, %v16_v3  ;;  %v116_v8 = vld [vmem:[%s200_s2] ss:$0 sm:$0xff] }
   0x5   :  { %114 = vmatpush.msra.mxu2 %v21_v0 }
   0x6   :  { %110 = vmatmul.msk.f32.vlgmr.msra.gmra.mxu2 %vm26_vm0, %v18_v4 }
   0xb   :  { %112 = vmatmul.msk.f32.gmra.mxu3 %vm26_vm0, %v20_v5 }
   0xc   :  { %107 = vmatmul.msk.f32.gmra.mxu0 %vm26_vm0, %v15_v6  ;;  %109 = vmatmul.msk.f32.gmra.mxu1 %vm26_vm0, %v17_v7 }
  0x81   :  { %v65_v9 = vpop.f32.mrf.mxu0  ;;  %v71_v10 = vpop.f32.mrf.mxu1 }
  0x82   :  { %v66_v11 = vadd.f32 %v116_v8, %v65_v9  ;;  %v72_v12 = vadd.f32 %v116_v8, %v71_v10 }
  0x84   :  { %v86_v13 = vmax.f32 %v66_v11, 0.0  ;;  %v88_v14 = vmax.f32 %v72_v12, 0.0 }
  0x86   :  { %94 = vst.msk [vmem:[%s201_s3] sm:$0xff] %vm93_vm1, %v86_v13  ;;  %v80_v15 = vpop.f32.mrf.mxu3 }
  0x87   :  { %96 = vst.msk [vmem:[%s201_s3 + $0x10] sm:$0xff] %vm93_vm1, %v88_v14  ;;  %v81_v16 = vadd.f32 %v116_v8, %v80_v15 }
  0x89   :  { %v91_v17 = vmax.f32 %v81_v16, 0.0  ;;  %v68_v18 = vpop.f32.mrf.mxu0  ;;  %v74_v19 = vpop.f32.mrf.mxu1 }
  0x8a   :  { %v69_v20 = vadd.f32 %v116_v8, %v68_v18  ;;  %v75_v21 = vadd.f32 %v116_v8, %v74_v19  ;;  %v77_v22 = vpop.f32.mrf.mxu2 }
  0x8b   :  { %99 = vst.msk [vmem:[%s201_s3 + $0x28] sm:$0xff] %vm93_vm1, %v91_v17  ;;  %v78_v23 = vadd.f32 %v116_v8, %v77_v22 }
  0x8c   :  { %v87_v24 = vmax.f32 %v69_v20, 0.0  ;;  %v89_v25 = vmax.f32 %v75_v21, 0.0 }
  0x8d   :  { %v90_v26 = vmax.f32 %v78_v23, 0.0 }
  0x8e   :  { %95 = vst.msk [vmem:[%s201_s3 + $0x8] sm:$0xff] %vm93_vm1, %v87_v24  ;;  %v83_v27 = vpop.f32.mrf.mxu3 }
  0x8f   :  { %97 = vst.msk [vmem:[%s201_s3 + $0x18] sm:$0xff] %vm93_vm1, %v89_v25  ;;  %v84_v28 = vadd.f32 %v116_v8, %v83_v27 }
  0x90   :  { %98 = vst.msk [vmem:[%s201_s3 + $0x20] sm:$0xff] %vm93_vm1, %v90_v26 }
  0x91   :  { %v92_v29 = vmax.f32 %v84_v28, 0.0 }
  0x93   :  { %101 = vst.msk [vmem:[%s201_s3 + $0x30] sm:$0x3] %vm100_vm2, %v92_v29 }

</bundles_post_ra>
